<compile_context>
chip_gen: v5e
topology: v5e:2x2
jax: 0.10.0
libtpu: 0.0.40
codegen_flags: <defaults>
</compile_context>

<pallas_src>
import jax
import jax.numpy as jnp
from jax.experimental import pallas as pl
from jax.experimental.pallas import tpu as pltpu  # noqa: F401  (kept for TPU-specific tuning hooks)

# ---- Up1D hyper-parameters: Up1D(in_channel=4, out_channel=8, kernel=8) ----
B = 2
CIN = 4
COUT = 8
K = 8
STRIDE = 2
PADDING = K // 2                 # source passes kernel / 2
L = 16
R = 2                            # SubPixel1d upsampling factor

L_OUT = (L - 1) * STRIDE - 2 * PADDING + K    # ConvTranspose1d output length (=30)
K2 = K // STRIDE                 # taps per polyphase branch (=4)
M = L_OUT // STRIDE              # output positions per phase (=15)
CHALF = COUT // R                # channels after SubPixel (=4)
S4 = STRIDE * R                  # interleave quad (phase, r) per spatial position m (=4)
WIN0 = PADDING // 2 + 1          # window start offset into the halo-padded input (=3)
N_ROWS = B * M                   # im2col rows covering both batches (=30)
N_K = K2 * CIN + 1               # contraction dim: polyphase taps + ones (bias) column (=17)
N_COLS = CHALF * S4              # output columns in (c, phase, r) order (=16)


def up1d_kernel(slab_ref, w_ref, z_ref):
    """slab_ref: (N_ROWS, N_K)   polyphase im2col rows, trailing constant-1 column
       w_ref:    (N_K, N_COLS)   repacked ConvTranspose1d weight + bias as last row
       z_ref:    (N_ROWS, N_COLS) relu(convT(x) + b), columns already SubPixel-ordered:
                                  z[b*M + m, 4*c + s] == final_out[b, c, S4*m + s]"""
    # Single MXU matmul for both batches and both polyphase branches; bias is folded
    # into the matmul via the ones column, ReLU fused, one lane-dense store.
    # Dropout(p=0.5) in eval/inference mode is the identity.
    # TODO(synk): training-mode dropout not modeled (source's `self.drop` is undefined anyway).
    z_ref[...] = jnp.maximum(
        jnp.dot(slab_ref[...], w_ref[...], preferred_element_type=jnp.float32),
        0.0)


@jax.jit
def up1d_forward(x_ncw, weight, bias):
    """x_ncw: (B, CIN, L) f32 -> (B, COUT // R, R * L_OUT) f32."""
    # ---- layout plumbing in XLA (fuses; data volume ~4 KiB so this is free) ----
    # NCW -> NLC + one zero halo row each side covers every polyphase window.
    x_pad = jnp.pad(jnp.transpose(x_ncw, (0, 2, 1)), ((0, 0), (1, 1), (0, 0)))  # (B, L+2, CIN)
    # Polyphase im2col: slab[b*M + m, j*CIN + i] = x_pad[b, m + WIN0 - j, i]
    # (only the K/2 taps that hit non-zero-stuffed samples; both output phases
    #  share the same shifted windows of the original input).
    windows = [x_pad[:, WIN0 - j:WIN0 - j + M, :] for j in range(K2)]           # each (B, M, CIN)
    slab = jnp.concatenate(windows, axis=-1).reshape(N_ROWS, K2 * CIN)
    slab = jnp.concatenate([slab, jnp.ones((N_ROWS, 1), jnp.float32)], axis=-1)  # bias column

    # One-time weight/bias repack.  weight[i, o, k] with o = R*c + r, k = STRIDE*j + phase.
    w5 = weight.reshape(CIN, CHALF, R, K2, STRIDE)                  # [i, c, r, j, phase]
    w_perm = jnp.transpose(w5, (3, 0, 1, 4, 2)).reshape(K2 * CIN, N_COLS)
    b_row = jnp.broadcast_to(bias.reshape(CHALF, 1, R),
                             (CHALF, STRIDE, R)).reshape(1, N_COLS)
    w_aug = jnp.concatenate([w_perm, b_row], axis=0)                # (N_K, N_COLS)

    # Gridless call: whole arrays are the blocks (well under VMEM on every gen);
    # at this size a grid / dimension_semantics would only add per-step overhead.
    z = pl.pallas_call(
        up1d_kernel,
        out_shape=jax.ShapeDtypeStruct((N_ROWS, N_COLS), jnp.float32),
    )(slab, w_aug)

    # Fused SubPixel1d(r=2): column 4*c + s of row b*M + m is output position S4*m + s
    # of channel c.  Pure layout reshuffle -> leave it to XLA after the kernel.
    # TODO(synk): the source forward literally returns SubPixel1d(x, r=2) (typo that
    # discards the conv branch) and SubPixel1d is not defined there; we implement the
    # intended pipeline conv_transpose -> dropout(eval) -> relu -> subpixel on the conv output.
    return (z.reshape(B, M, CHALF, S4)
             .transpose(0, 2, 1, 3)
             .reshape(B, CHALF, R * L_OUT))


def init_params(key):
    kw, kb = jax.random.split(key)
    # nn.init.orthogonal_ on weight (CIN, COUT, K): orthonormal rows of the (CIN, COUT*K) flattening.
    a = jax.random.normal(kw, (COUT * K, CIN), jnp.float32)
    q, _ = jnp.linalg.qr(a)                      # (COUT*K, CIN) orthonormal columns
    weight = q.T.reshape(CIN, COUT, K)
    bound = 1.0 / (CIN * K) ** 0.5               # PyTorch default bias init range
    bias = jax.random.uniform(kb, (COUT,), jnp.float32, minval=-bound, maxval=bound)
    return weight, bias


def reference_forward(x_ncw, weight, bias):
    """Independent plain-JAX reference (scatter formulation of ConvTranspose1d)."""
    l_full = (L - 1) * STRIDE + K
    y_full = jnp.zeros((B, COUT, l_full), jnp.float32)
    for l in range(L):
        for k in range(K):
            y_full = y_full.at[:, :, l * STRIDE + k].add(
                jnp.einsum("bi,io->bo", x_ncw[:, :, l], weight[:, :, k]))
    y = y_full[:, :, PADDING:PADDING + L_OUT] + bias[None, :, None]
    y = jnp.maximum(y, 0.0)
    return (y.reshape(B, COUT // R, R, L_OUT)
             .transpose(0, 1, 3, 2)
             .reshape(B, COUT // R, R * L_OUT))


if __name__ == "__main__":
    key = jax.random.PRNGKey(0)
    kx, kp = jax.random.split(key)
    x = jax.random.normal(kx, (B, CIN, L), jnp.float32)
    weight, bias = init_params(kp)

    out = jax.block_until_ready(up1d_forward(x, weight, bias))
    ref = reference_forward(x, weight, bias)

    assert out.shape == (B, COUT // R, R * L_OUT), out.shape
    assert jnp.allclose(out, ref, atol=1e-5, rtol=1e-5), float(jnp.max(jnp.abs(out - ref)))
    print("KERNEL_OK")
</pallas_src>

<mosaic_0001>
module attributes {stable_mosaic.version = 11 : i64} {
  func.func @up1d_kernel(%arg0: memref<30x17xf32, #tpu.memory_space<vmem>>, %arg1: memref<17x16xf32, #tpu.memory_space<vmem>>, %arg2: memref<30x16xf32, #tpu.memory_space<vmem>>) attributes {dimension_semantics = [], scalar_prefetch = 0 : i64, scratch_operands = 0 : i64, tpu.core_type = #tpu.core_type<tc>} {
    %c0 = arith.constant 0 : index
    %c0_0 = arith.constant 0 : index
    %0 = vector.load %arg0[%c0, %c0_0] : memref<30x17xf32, #tpu.memory_space<vmem>>, vector<30x17xf32>
    %c0_1 = arith.constant 0 : index
    %c0_2 = arith.constant 0 : index
    %1 = vector.load %arg1[%c0_1, %c0_2] : memref<17x16xf32, #tpu.memory_space<vmem>>, vector<17x16xf32>
    %cst = arith.constant dense<0.000000e+00> : vector<30x16xf32>
    %2 = tpu.matmul %0, %1, %cst {dimension_numbers = #tpu.dot_dimension_numbers<[1], [0], [0], [1], [0, 0, 1, 1], [], []>} : vector<30x17xf32>, vector<17x16xf32>, vector<30x16xf32> -> vector<30x16xf32>
    %cst_3 = arith.constant 0.000000e+00 : f32
    %3 = vector.broadcast %cst_3 : f32 to vector<30x16xf32>
    %4 = arith.maximumf %2, %3 : vector<30x16xf32>
    %c0_4 = arith.constant 0 : index
    %c0_5 = arith.constant 0 : index
    %5 = vector.load %arg2[%c0_4, %c0_5] : memref<30x16xf32, #tpu.memory_space<vmem>>, vector<30x16xf32>
    tpu.vector_store %arg2[%c0_4, %c0_5], %4 {strides = array<i32>} : memref<30x16xf32, #tpu.memory_space<vmem>>, vector<30x16xf32>,
    return
  }
}

</mosaic_0001>

<bundles_post_ra>
// kernel: up1d_forward.1
= control target key start
LH: loop header
LB: loop body
LE: loop exit
PB: predicated region body
PF: predicated region fallthrough
CT: control target
= control target key end

     0   :  { %vm31_vm0 = vcmask 1040384   ;;  %vm18_vm1 = vcmask 138240   ;;  %vm68_vm2 = vcmask 130048   ;;  %vm72_vm3 = vcmask 128000   ;;  %s140_s1 = inlined_call_operand.vmem [shape: f32[17,16], index: 1, kind: input, shape index: {}]   ;;  %s141_s0 = inlined_call_operand.vmem [shape: f32[30,17], index: 0, kind: input, shape index: {}]   ;;  %s142_s2 = inlined_call_operand.vmem [shape: f32[30,16], index: 2, kind: output, shape index: {}]  }
   0x1   :  { %v17_v0 = vld [vmem:[%s140_s1 + $0x10] sm:$0x1]  ;;  %v16_v1 = vld [vmem:[%s140_s1 + $0x8] sm:$0xff]  ;;  %v15_v2 = vld [vmem:[%s140_s1] sm:$0xff] }
   0x2   :  { %84 = vmatpush.msk.msra.mxu2 %vm31_vm0, %v17_v0  ;;  %85 = vmatpush.msk.msra.mxu3 %vm31_vm0, %v17_v0  ;;  %v13_v3 = vld [vmem:[%s141_s0 + $0x10] sm:$0xff]  ;;  %v14_v4 = vld [vmem:[%s141_s0 + $0x18] sm:$0x3f]  ;;  %v11_v5 = vld [vmem:[%s141_s0] sm:$0xff] }
   0x3   :  { %78 = vmatpush.msk.msra.mxu0 %vm31_vm0, %v17_v0  ;;  %83 = vmatpush.msk.msra.mxu1 %vm31_vm0, %v17_v0  ;;  %v12_v6 = vld [vmem:[%s141_s0 + $0x8] sm:$0xff] }
   0x4   :  { %87 = vmatpush.msra.mxu2 %v16_v1  ;;  %88 = vmatpush.msra.mxu3 %v16_v1 }
   0x5   :  { %49 = vmatpush.msra.mxu0 %v16_v1  ;;  %86 = vmatpush.msra.mxu1 %v16_v1 }
   0x6   :  { %90 = vmatpush.msra.mxu2 %v15_v2  ;;  %91 = vmatpush.msra.mxu3 %v15_v2 }
   0x7   :  { %81 = vmatmul.msk.f32.vlgmr.msra.gmra.mxu2 %vm18_vm1, %v13_v3  ;;  %82 = vmatmul.msk.f32.vlgmr.msra.gmra.mxu3 %vm18_vm1, %v14_v4 }
   0x8   :  { %50 = vmatpush.msra.mxu0 %v15_v2  ;;  %89 = vmatpush.msra.mxu1 %v15_v2 }
   0x9   :  { %79 = vmatmul.msk.f32.vlgmr.msra.gmra.mxu0 %vm18_vm1, %v11_v5  ;;  %80 = vmatmul.msk.f32.vlgmr.msra.gmra.mxu1 %vm18_vm1, %v12_v6 }
  0x86   :  { %v52_v7 = vpop.f32.mrf.mxu0  ;;  %v55_v8 = vpop.f32.mrf.mxu1 }
  0x87   :  { %v64_v9 = vmax.f32 %v52_v7, 0.0  ;;  %v65_v10 = vmax.f32 %v55_v8, 0.0 }
  0x89   :  { %69 = vst.msk [vmem:[%s142_s2] sm:$0xff] %vm68_vm2, %v64_v9 }
  0x8a   :  { %70 = vst.msk [vmem:[%s142_s2 + $0x8] sm:$0xff] %vm68_vm2, %v65_v10  ;;  %v58_v11 = vpop.f32.mrf.mxu2  ;;  %v61_v12 = vpop.f32.mrf.mxu3 }
  0x8b   :  { %v66_v13 = vmax.f32 %v58_v11, 0.0  ;;  %v67_v14 = vmax.f32 %v61_v12, 0.0 }
  0x8d   :  { %71 = vst.msk [vmem:[%s142_s2 + $0x10] sm:$0xff] %vm68_vm2, %v66_v13 }
  0x8e   :  { %73 = vst.msk [vmem:[%s142_s2 + $0x18] sm:$0x3f] %vm72_vm3, %v67_v14 }

</bundles_post_ra>
